<compile_context>
chip_gen: v6e
topology: v6e:2x2x1
jax: 0.10.0
libtpu: 0.0.40
codegen_flags: <defaults>
</compile_context>

<pallas_src>
import functools

import jax
import jax.numpy as jnp
import numpy as np
from jax import lax
from jax.experimental import pallas as pl
from jax.experimental.pallas import tpu as pltpu

_LANE = 128                       # lane width (last-dim alignment)
_SUBLANE = 8


def _ceil_to(n, m):
    return ((n + m - 1) // m) * m


def _pick_tile(n, max_tile):
    """Return (padded_n, tile): full-dim block if n fits, else pad n up to a
    multiple of max_tile (max_tile is already lane/sublane aligned)."""
    if n <= max_tile:
        return n, n
    return _ceil_to(n, max_tile), max_tile


def _default_vmem_limit():
    """Generation-aware scoped-VMEM budget: ~96 MiB on the 128 MiB parts
    (v5e/v6e), ~48 MiB on v7x (64 MiB physical)."""
    try:
        phys = int(pltpu.get_tpu_info().vmem_capacity_bytes)
        return max(32 * 1024 * 1024, min(phys * 3 // 4, 100 * 1024 * 1024))
    except Exception:
        return 48 * 1024 * 1024


_VMEM_LIMIT = _default_vmem_limit()


# ---------------------------------------------------------------------------
# Kernel A: pairwise squared L2 distances  d[b, e] = ||x_b - emb_e||^2
#   gridded over (B tiles, E tiles, D reduction), bf16 MXU, f32 accumulator.
#   Exemplars are stored pre-transposed [D, E] -> clean MXU weight layout.
# ---------------------------------------------------------------------------
def _sqdist_kernel(x_ref, e_ref, x2_ref, e2_ref, d_ref, acc_ref):
    kk = pl.program_id(2)

    @pl.when(kk == 0)
    def _init():
        acc_ref[...] = jnp.zeros_like(acc_ref)

    # bf16 x bf16 -> f32 on the MXU, plain (tb,td)@(td,te) contraction.
    acc_ref[...] += jnp.dot(x_ref[...], e_ref[...],
                            preferred_element_type=jnp.float32)

    @pl.when(kk == pl.num_programs(2) - 1)
    def _finalize():
        d = x2_ref[...] + e2_ref[...] - 2.0 * acc_ref[...]
        d_ref[...] = jnp.maximum(d, 0.0)          # guard tiny negatives


def pairwise_sq_dists(x_bf16, emb_t_bf16, x_sq, emb_sq, *, tb, te, td):
    Bp, Dp = x_bf16.shape
    Ep = emb_t_bf16.shape[1]
    grid = (Bp // tb, Ep // te, Dp // td)
    cost = pl.CostEstimate(
        flops=2 * Bp * Ep * Dp + 3 * Bp * Ep,
        transcendentals=0,
        bytes_accessed=(Bp * Dp + Ep * Dp) * 2 + Bp * Ep * 4 + (Bp + Ep) * 4)
    return pl.pallas_call(
        _sqdist_kernel,
        out_shape=jax.ShapeDtypeStruct((Bp, Ep), jnp.float32),
        grid_spec=pltpu.PrefetchScalarGridSpec(
            num_scalar_prefetch=0,
            grid=grid,
            in_specs=[
                pl.BlockSpec((tb, td), lambda i, j, k: (i, k)),   # x tile
                pl.BlockSpec((td, te), lambda i, j, k: (k, j)),   # emb^T tile
                pl.BlockSpec((tb, 1), lambda i, j, k: (i, 0)),    # ||x||^2
                pl.BlockSpec((1, te), lambda i, j, k: (0, j)),    # ||emb||^2
            ],
            out_specs=pl.BlockSpec((tb, te), lambda i, j, k: (i, j)),
            scratch_shapes=[pltpu.VMEM((tb, te), jnp.float32)]),
        compiler_params=pltpu.CompilerParams(
            dimension_semantics=("parallel", "parallel", "arbitrary"),
            vmem_limit_bytes=_VMEM_LIMIT),
        cost_estimate=cost,
    )(x_bf16, emb_t_bf16, x_sq, emb_sq)


# ---------------------------------------------------------------------------
# Kernel B: fused NKS summary
#   w          = exp(-d) * (d <= min(tau^2, kth_dist))            (VPU/EUP)
#   [num|den]  = bf16(w) @ bf16([event | at_risk])   (single-pass MXU matmul)
#   out        = clamp((num + base_ev) / (den + base_ar + 1e-12), 1e-12, 1-1e-12)
# ---------------------------------------------------------------------------
def _nks_kernel(d_ref, kth_ref, tbl_ref, base_ref, out_ref, acc_ref,
                *, tau_squared, t_pad):
    jj = pl.program_id(1)

    @pl.when(jj == 0)
    def _init():
        acc_ref[...] = jnp.zeros_like(acc_ref)

    d = d_ref[...]                                              # [tb, te] f32
    thresh = jnp.minimum(kth_ref[...], tau_squared)             # [tb, 1]
    # bf16 operands -> single-pass MXU matmul; accumulate in the f32 scratch.
    w = jnp.where(d <= thresh, jnp.exp(-d), 0.0).astype(jnp.bfloat16)
    acc_ref[...] += jnp.dot(w, tbl_ref[...],
                            preferred_element_type=jnp.float32)

    @pl.when(jj == pl.num_programs(1) - 1)
    def _finalize():
        totals = acc_ref[...] + base_ref[...]                   # [tb, 2*Tp]
        numer = totals[:, :t_pad]
        denom = totals[:, t_pad:] + 1e-12
        out_ref[...] = jnp.clip(numer / denom, 1e-12, 1.0 - 1e-12)


def nks_summary_matmul(d, kth, table, baseline, *, tau_squared, t_pad, tb, te):
    Bp, Ep = d.shape
    kernel = functools.partial(_nks_kernel, tau_squared=float(tau_squared),
                               t_pad=int(t_pad))
    grid = (Bp // tb, Ep // te)
    cost = pl.CostEstimate(
        flops=2 * Bp * Ep * 2 * t_pad + 5 * Bp * Ep + 3 * Bp * t_pad,
        transcendentals=Bp * Ep,
        bytes_accessed=Bp * Ep * 4 + Ep * 2 * t_pad * 2 + Bp * t_pad * 4)
    # TODO(synk): on v7x (2 TCs) a single B block leaves one core idle; split
    # the E reduction into two parallel partials if small-batch latency matters.
    return pl.pallas_call(
        kernel,
        out_shape=jax.ShapeDtypeStruct((Bp, t_pad), jnp.float32),
        grid_spec=pltpu.PrefetchScalarGridSpec(
            num_scalar_prefetch=0,
            grid=grid,
            in_specs=[
                pl.BlockSpec((tb, te), lambda i, j: (i, j)),           # distances
                pl.BlockSpec((tb, 1), lambda i, j: (i, 0)),            # kth dist
                pl.BlockSpec((te, 2 * t_pad), lambda i, j: (j, 0)),    # [ev|ar] bf16
                pl.BlockSpec((1, 2 * t_pad), lambda i, j: (0, 0)),     # baseline
            ],
            out_specs=pl.BlockSpec((tb, t_pad), lambda i, j: (i, 0)),
            scratch_shapes=[pltpu.VMEM((tb, 2 * t_pad), jnp.float32)]),
        compiler_params=pltpu.CompilerParams(
            dimension_semantics=("parallel", "arbitrary"),
            vmem_limit_bytes=_VMEM_LIMIT),
        cost_estimate=cost,
    )(d, kth, table, baseline)


# ---------------------------------------------------------------------------
# Module-equivalent wrapper
# ---------------------------------------------------------------------------
class NKSSummaryJax:
    """JAX/Pallas port of NKSSummary (exact KNN in place of the hnswlib index)."""

    def __init__(self, exemplar_embeddings, exemplar_labels, tau, k_neighbors,
                 max_batch_tile=256, max_exemplar_tile=512, max_dim_tile=512):
        # 256-multiples feed the full 2x256x256 MXU on v6e/v7x; 128-multiples
        # are the hard minimum (v5e lane alignment).
        assert max_batch_tile % _SUBLANE == 0
        assert max_exemplar_tile % _LANE == 0 and max_dim_tile % _LANE == 0
        self.tau_squared = float(tau) ** 2
        self.k = int(k_neighbors)
        self.max_batch_tile = int(max_batch_tile)

        emb = np.asarray(exemplar_embeddings, np.float32)
        E, D = emb.shape
        T = exemplar_labels.shape[2]
        self.n_exemplars, self.n_dim, self.n_durations = E, D, T

        # ---- count tables (same math as the PyTorch module's __init__) ----
        exemplar_event_counts = exemplar_labels[:, 0, :]
        at_risk_in = np.hstack((exemplar_labels[:, 1, :], np.zeros((E, 1))))
        exemplar_censor_counts = (at_risk_in[:, :-1] - at_risk_in[:, 1:]
                                  - exemplar_event_counts)

        log_ev = np.log(np.clip(exemplar_event_counts.astype(np.float32),
                                1e-12, None))
        log_cn = np.log(np.clip(exemplar_censor_counts.astype(np.float32),
                                1e-12, None))
        log_bev = -27.6310211159 * np.ones((T,), np.float32)
        log_bcn = -27.6310211159 * np.ones((T,), np.float32)

        # Constants of the forward pass, hoisted out of __call__ (the PyTorch
        # reference recomputes exp / flip / cumsum on every forward).
        ev = np.exp(log_ev)                                              # [E, T]
        cn = np.exp(log_cn)
        ar = np.flip(np.cumsum(np.flip(ev + cn, axis=1), axis=1), axis=1)
        bev = np.exp(log_bev)                                            # [T]
        bcn = np.exp(log_bcn)
        bar = np.flip(np.cumsum(np.flip(bev + bcn)))

        # ---- padded / tiled layouts ----
        self.t_pad = _ceil_to(max(T, 1), _LANE)        # lane-dense output
        self.e_pad, self.te = _pick_tile(E, max_exemplar_tile)
        self.d_pad, self.td = _pick_tile(D, max_dim_tile)

        # Mean-center exemplars (and inputs at call time): squared distances
        # are shift-invariant, and centering avoids bf16 catastrophic
        # cancellation in the ||x||^2 + ||e||^2 - 2 x.e expansion.
        center = emb.mean(axis=0)
        self.center = jnp.asarray(center)                                # [D]
        emb_c = emb - center[None, :]

        # Exemplars stored PRE-TRANSPOSED [Dp, Ep] in bf16 -> kernel A is a
        # plain contraction with a clean MXU weight layout.  Padded exemplar
        # columns sit very far away so they never pass the kth/tau thresholds;
        # their table rows are zero so they could not contribute anyway.
        emb_t = np.zeros((self.d_pad, self.e_pad), np.float32)
        emb_t[:D, :E] = emb_c.T
        if self.e_pad > E:
            emb_t[:, E:] = 1.0e4
        self.emb_t_bf16 = jnp.asarray(emb_t, jnp.bfloat16)
        emb_rt = self.emb_t_bf16.astype(jnp.float32)     # bf16-rounded values
        self.emb_sq = jnp.sum(emb_rt * emb_rt, axis=0, keepdims=True)    # [1, Ep]

        # Fused count table [Ep, 2*Tp] = [event | at_risk], zero padded, bf16
        # so kernel B's matmul is a single-pass MXU op.
        table = np.zeros((self.e_pad, 2 * self.t_pad), np.float32)
        table[:E, :T] = ev
        table[:E, self.t_pad:self.t_pad + T] = ar
        self.table = jnp.asarray(table, jnp.bfloat16)

        # Fused baseline row [1, 2*Tp] = [baseline_event | baseline_at_risk].
        base = np.zeros((1, 2 * self.t_pad), np.float32)
        base[0, :T] = bev
        base[0, self.t_pad:self.t_pad + T] = bar
        self.baseline = jnp.asarray(base)

    def forward_with_intermediates(self, x):
        x = jnp.asarray(x, jnp.float32)
        B, D = x.shape
        assert D == self.n_dim
        # Full padded batch in one tile whenever it fits -> the [Ep, 2*Tp]
        # table streams from HBM only once in kernel B.
        b_pad, tb = _pick_tile(max(B, _SUBLANE), self.max_batch_tile)

        x_c = x - self.center[None, :]
        x_p = jnp.zeros((b_pad, self.d_pad), jnp.float32).at[:B, :D].set(x_c)
        x_bf16 = x_p.astype(jnp.bfloat16)
        x_rt = x_bf16.astype(jnp.float32)
        x_sq = jnp.sum(x_rt * x_rt, axis=-1, keepdims=True)        # [b_pad, 1]

        # ---- kernel A: exact pairwise squared distances (replaces ANN) ----
        sq_dists = pairwise_sq_dists(x_bf16, self.emb_t_bf16, x_sq, self.emb_sq,
                                     tb=tb, te=self.te, td=self.td)

        # ---- k-th smallest distance per row: TPU-native PartialReduce
        # (the reference used an approximate ANN, so an approximate kth is in
        # spirit; no full XLA sort, no negation temp).
        # TODO(synk): ties exactly at the k-th distance admit >k neighbors,
        # unlike the reference's explicit top-k index scatter.
        k = min(self.k, self.n_exemplars)
        kth_vals, _ = lax.approx_min_k(sq_dists, k, recall_target=0.99)
        kth = jnp.max(kth_vals, axis=-1, keepdims=True)             # [b_pad, 1]

        # ---- kernel B: fused weights + single bf16 matmul + clamp ----
        out = nks_summary_matmul(sq_dists, kth, self.table, self.baseline,
                                 tau_squared=self.tau_squared,
                                 t_pad=self.t_pad, tb=tb, te=self.te)
        return (out[:B, :self.n_durations],
                sq_dists[:B, :self.n_exemplars],
                kth[:B, 0])

    def __call__(self, x):
        return self.forward_with_intermediates(x)[0]


# ---------------------------------------------------------------------------
# Demo
# ---------------------------------------------------------------------------
if __name__ == "__main__":
    B, E, D, T = 48, 512, 512, 16   # batch, exemplars, embed dim, durations
    K_NEIGHBORS = 8
    TAU = 2.0

    key = jax.random.PRNGKey(0)
    k1, k2, k3, k4 = jax.random.split(key, 4)

    # small-scale embeddings so neighbors fall well within tau^2
    exemplar_embeddings = 0.05 * jax.random.normal(k1, (E, D), jnp.float32)
    x = 0.05 * jax.random.normal(k2, (B, D), jnp.float32)

    # consistent synthetic survival labels: events/censors > 0,
    # at-risk = reverse cumulative sum of (event + censor)
    events = np.asarray(jax.random.uniform(k3, (E, T), jnp.float32,
                                           minval=0.5, maxval=2.0))
    censors = np.asarray(jax.random.uniform(k4, (E, T), jnp.float32,
                                            minval=0.5, maxval=2.0))
    at_risk = np.flip(np.cumsum(np.flip(events + censors, axis=1), axis=1),
                      axis=1)
    exemplar_labels = np.zeros((E, 2, T), dtype=np.float64)
    exemplar_labels[:, 0, :] = events
    exemplar_labels[:, 1, :] = at_risk

    # 256-aligned E/D tiles (full-width MXU on v6e/v7x) that still exercise
    # the multi-tile grid / accumulator path at this demo size.
    model = NKSSummaryJax(np.asarray(exemplar_embeddings), exemplar_labels,
                          tau=TAU, k_neighbors=K_NEIGHBORS,
                          max_batch_tile=32, max_exemplar_tile=256,
                          max_dim_tile=256)

    out, sq_d, kth = model.forward_with_intermediates(x)
    out = jax.block_until_ready(out)

    assert out.shape == (B, T)
    assert bool(jnp.all(out >= 1e-12)) and bool(jnp.all(out <= 1.0 - 1e-12))

    # kernel A sanity check (loose: bf16 MXU vs f32 XLA)
    ref_d = jnp.sum((x[:, None, :] - exemplar_embeddings[None, :, :]) ** 2,
                    axis=-1)
    np.testing.assert_allclose(np.asarray(sq_d), np.asarray(ref_d),
                               rtol=5e-2, atol=5e-2)

    # kernel B check against a plain-JAX reference that consumes the same
    # distances / kth threshold (mask decisions are bit-identical, only matmul
    # rounding differs)
    keep = (sq_d <= TAU ** 2) & (sq_d <= kth[:, None])
    w = jnp.where(keep, jnp.exp(-sq_d), 0.0)
    ev_tbl = model.table[:E, :T].astype(jnp.float32)
    ar_tbl = model.table[:E, model.t_pad:model.t_pad + T].astype(jnp.float32)
    bev = model.baseline[0, :T]
    bar = model.baseline[0, model.t_pad:model.t_pad + T]
    numer = w @ ev_tbl + bev[None, :]
    denom = w @ ar_tbl + bar[None, :] + 1e-12
    ref_out = jnp.clip(numer / denom, 1e-12, 1.0 - 1e-12)
    np.testing.assert_allclose(np.asarray(out), np.asarray(ref_out),
                               rtol=2e-2, atol=1e-9)

    print("KERNEL_OK")
</pallas_src>

<mosaic_0001>
module attributes {stable_mosaic.version = 11 : i64} {
  func.func @_sqdist_kernel(%arg0: i32, %arg1: i32, %arg2: i32, %arg3: memref<32x256xbf16, #tpu.memory_space<vmem>>, %arg4: memref<256x256xbf16, #tpu.memory_space<vmem>>, %arg5: memref<32x1xf32, #tpu.memory_space<vmem>>, %arg6: memref<1x256xf32, #tpu.memory_space<vmem>>, %arg7: memref<32x256xf32, #tpu.memory_space<vmem>>, %arg8: memref<32x256xf32, #tpu.memory_space<vmem>>) attributes {dimension_semantics = [#tpu.dimension_semantics<parallel>, #tpu.dimension_semantics<parallel>, #tpu.dimension_semantics<arbitrary>], iteration_bounds = array<i64: 2, 2, 2>, scalar_prefetch = 0 : i64, scratch_operands = 1 : i64, tpu.core_type = #tpu.core_type<tc>, window_params = [{transform_indices = @transform_0, window_bounds = array<i64: 32, 256>}, {transform_indices = @transform_1, window_bounds = array<i64: 256, 256>}, {transform_indices = @transform_2, window_bounds = array<i64: 32, 1>}, {transform_indices = @transform_3, window_bounds = array<i64: 1, 256>}, {transform_indices = @transform_4, window_bounds = array<i64: 32, 256>}]} {
    %c0_i32 = arith.constant 0 : i32
    %0 = arith.cmpi eq, %arg2, %c0_i32 : i32
    %1 = arith.extui %0 : i1 to i32
    %c0_i32_0 = arith.constant 0 : i32
    %2 = arith.cmpi ne, %1, %c0_i32_0 : i32
    scf.if %2 {
      %cst_9 = arith.constant 0.000000e+00 : f32
      %12 = vector.broadcast %cst_9 : f32 to vector<32x256xf32>
      %c0_10 = arith.constant 0 : index
      %c0_11 = arith.constant 0 : index
      %13 = vector.load %arg8[%c0_10, %c0_11] : memref<32x256xf32, #tpu.memory_space<vmem>>, vector<32x256xf32>
      tpu.vector_store %arg8[%c0_10, %c0_11], %12 {strides = array<i32>} : memref<32x256xf32, #tpu.memory_space<vmem>>, vector<32x256xf32>,
    } else {
    }
    %c0 = arith.constant 0 : index
    %c0_1 = arith.constant 0 : index
    %3 = vector.load %arg8[%c0, %c0_1] : memref<32x256xf32, #tpu.memory_space<vmem>>, vector<32x256xf32>
    %c0_2 = arith.constant 0 : index
    %c0_3 = arith.constant 0 : index
    %4 = vector.load %arg3[%c0_2, %c0_3] : memref<32x256xbf16, #tpu.memory_space<vmem>>, vector<32x256xbf16>
    %c0_4 = arith.constant 0 : index
    %c0_5 = arith.constant 0 : index
    %5 = vector.load %arg4[%c0_4, %c0_5] : memref<256x256xbf16, #tpu.memory_space<vmem>>, vector<256x256xbf16>
    %cst = arith.constant dense<0.000000e+00> : vector<32x256xf32>
    %6 = tpu.matmul %4, %5, %cst {dimension_numbers = #tpu.dot_dimension_numbers<[1], [0], [0], [1], [0, 0, 1, 1], [], []>} : vector<32x256xbf16>, vector<256x256xbf16>, vector<32x256xf32> -> vector<32x256xf32>
    %7 = arith.addf %3, %6 : vector<32x256xf32>
    %c0_6 = arith.constant 0 : index
    %c0_7 = arith.constant 0 : index
    %8 = vector.load %arg8[%c0_6, %c0_7] : memref<32x256xf32, #tpu.memory_space<vmem>>, vector<32x256xf32>
    tpu.vector_store %arg8[%c0_6, %c0_7], %7 {strides = array<i32>} : memref<32x256xf32, #tpu.memory_space<vmem>>, vector<32x256xf32>,
    %c1_i32 = arith.constant 1 : i32
    %9 = arith.cmpi eq, %arg2, %c1_i32 : i32
    %10 = arith.extui %9 : i1 to i32
    %c0_i32_8 = arith.constant 0 : i32
    %11 = arith.cmpi ne, %10, %c0_i32_8 : i32
    scf.if %11 {
      %c0_9 = arith.constant 0 : index
      %c0_10 = arith.constant 0 : index
      %12 = vector.load %arg5[%c0_9, %c0_10] : memref<32x1xf32, #tpu.memory_space<vmem>>, vector<32x1xf32>
      %c0_11 = arith.constant 0 : index
      %c0_12 = arith.constant 0 : index
      %13 = vector.load %arg6[%c0_11, %c0_12] : memref<1x256xf32, #tpu.memory_space<vmem>>, vector<1x256xf32>
      %14 = vector.broadcast %12 : vector<32x1xf32> to vector<32x256xf32>
      %15 = vector.broadcast %13 : vector<1x256xf32> to vector<32x256xf32>
      %16 = arith.addf %14, %15 : vector<32x256xf32>
      %c0_13 = arith.constant 0 : index
      %c0_14 = arith.constant 0 : index
      %17 = vector.load %arg8[%c0_13, %c0_14] : memref<32x256xf32, #tpu.memory_space<vmem>>, vector<32x256xf32>
      %cst_15 = arith.constant 2.000000e+00 : f32
      %18 = vector.broadcast %cst_15 : f32 to vector<32x256xf32>
      %19 = arith.mulf %18, %17 : vector<32x256xf32>
      %20 = arith.subf %16, %19 : vector<32x256xf32>
      %cst_16 = arith.constant 0.000000e+00 : f32
      %21 = vector.broadcast %cst_16 : f32 to vector<32x256xf32>
      %22 = arith.maximumf %20, %21 : vector<32x256xf32>
      %c0_17 = arith.constant 0 : index
      %c0_18 = arith.constant 0 : index
      %23 = vector.load %arg7[%c0_17, %c0_18] : memref<32x256xf32, #tpu.memory_space<vmem>>, vector<32x256xf32>
      tpu.vector_store %arg7[%c0_17, %c0_18], %22 {strides = array<i32>} : memref<32x256xf32, #tpu.memory_space<vmem>>, vector<32x256xf32>,
    } else {
    }
    return
  }
  func.func @transform_0(%arg0: i32, %arg1: i32, %arg2: i32) -> (i32, i32) {
    %c0_i32 = arith.constant 0 : i32
    return %arg0, %arg2 : i32, i32
  }
  func.func @transform_1(%arg0: i32, %arg1: i32, %arg2: i32) -> (i32, i32) {
    %c0_i32 = arith.constant 0 : i32
    return %arg2, %arg1 : i32, i32
  }
  func.func @transform_2(%arg0: i32, %arg1: i32, %arg2: i32) -> (i32, i32) {
    %c0_i32 = arith.constant 0 : i32
    %c0_i32_0 = arith.constant 0 : i32
    return %arg0, %c0_i32 : i32, i32
  }
  func.func @transform_3(%arg0: i32, %arg1: i32, %arg2: i32) -> (i32, i32) {
    %c0_i32 = arith.constant 0 : i32
    %c0_i32_0 = arith.constant 0 : i32
    return %c0_i32, %arg1 : i32, i32
  }
  func.func @transform_4(%arg0: i32, %arg1: i32, %arg2: i32) -> (i32, i32) {
    %c0_i32 = arith.constant 0 : i32
    return %arg0, %arg1 : i32, i32
  }
}

</mosaic_0001>

<bundles_post_ra>
// kernel: tpu_custom_call.1
= control target key start
LH: loop header
LB: loop body
LE: loop exit
PB: predicated region body
PF: predicated region fallthrough
CT: control target
= control target key end

     0   :  { %s1873_s0 = inlined_call_operand.hbm [shape: bf16[64,512], index: 0, kind: input, shape index: {}]   ;;  %s1874_s1 = inlined_call_operand.hbm [shape: bf16[512,512], index: 1, kind: input, shape index: {}]   ;;  %s1875_s2 = inlined_call_operand.vmem [shape: f32[64,1], index: 2, kind: input, shape index: {}]   ;;  %s1876_s3 = inlined_call_operand.vmem [shape: f32[1,512], index: 3, kind: input, shape index: {}]   ;;  %s1877_s4 = inlined_call_operand.hbm [shape: f32[64,512], index: 4, kind: output, shape index: {}]  }
   0x1   :  { %1892 = sst [smem:[#allocation22_spill]] %s1873_s0 }
   0x2   :  { %1893 = sst [smem:[#allocation23_spill]] %s1874_s1 }
   0x3   :  { %1894 = sst [smem:[#allocation24_spill]] %s1875_s2 }
   0x4   :  { %1895 = sst [smem:[#allocation25_spill]] %s1876_s3 }
   0x5   :  { %1896 = sst [smem:[#allocation26_spill]] %s1877_s4 }
   0x6   :  { %9 = vsyncpa [#allocation4], 0 }
   0x7   :  { %11 = vsyncpa [#allocation4 + $0x1], 0 }
   0x8   :  { %12 = vsyncpa [#allocation7], 0 }
   0x9   :  { %14 = vsyncpa [#allocation7 + $0x1], 0 }
   0xa   :  { %15 = vsyncpa [#allocation5], 0 }
   0xb   :  { %17 = vsyncpa [#allocation5 + $0x1], 0  ;;  %s1457_s15 = smov 0   ;;  %s1459_s16 = smov 0  }
   0xc   :  { %s1461_s17 = smov 0   ;;  %s1463_s18 = smov 0  }
   0xd   :  { %s1465_s19 = smov 0   ;;  %s1467_s20 = smov 0  }
   0xe   :  { %s1469_s21 = smov 0   ;;  %s1471_s22 = smov 0  }
   0xf   :  { %s1473_s23 = smov 0   ;;  %s1475_s24 = smov 0  }
  0x10   :  { %s1477_s25 = smov 0   ;;  %s1479_s26 = smov 0  }
  0x11   :  { %s1481_s27 = smov 0   ;;  %s1483_s28 = smov 0  }
  0x12   :  { %s1485_s29 = smov 0   ;;  %s1487_s30 = smov 0  }
  0x13 LB: > { %1897 = sst [smem:[#allocation12_spill]] %s1387_s22  ;;  %s887_s5 = sadd.s32 4294967295, %s1419_s30   ;;  %s1419_s30 = sphi %s1487_s30, %s23_s30   ;;  %s1415_s29 = sphi %s1485_s29, %s1946_s29   ;;  %s1411_s28 = sphi %s1483_s28, %s1945_s28   ;;  %s1407_s27 = sphi %s1481_s27, %s1957_s27   ;;  %s1403_s26 = sphi %s1479_s26, %s1956_s26   ;;  %s1399_s25 = sphi %s1477_s25, %s1942_s25   ;;  %s1395_s24 = sphi %s1475_s24, %s1955_s24   ;;  %s1391_s23 = sphi %s1473_s23, %s1954_s23   ;;  %s1387_s22 = sphi %s1471_s22, %s1953_s22   ;;  %s1383_s21 = sphi %s1469_s21, %s1941_s21   ;;  %s1379_s20 = sphi %s1467_s20, %s1952_s20   ;;  %s1375_s19 = sphi %s1465_s19, %s1951_s19   ;;  %s1371_s18 = sphi %s1463_s18, %s1950_s18   ;;  %s1367_s17 = sphi %s1461_s17, %s1949_s17   ;;  %s1363_s16 = sphi %s1459_s16, %s1948_s16   ;;  %s1359_s15 = sphi %s1457_s15, %s1947_s15  }
  0x14   : > { %1898 = sst [smem:[#allocation13_spill]] %s1395_s24  ;;  %s35_s6 = sadd.s32 1, %s1407_s27 }
  0x15   : > { %1899 = sst [smem:[#allocation14_spill]] %s1399_s25  ;;  %p1537_p0 = scmp.ge.s32.totalorder %s35_s6, 2 }
  0x16   : > { %1900 = sst [smem:[#allocation15_spill]] %s1403_s26  ;;  %p58_p1 = scmp.ne.s32.totalorder %s1391_s23, %s1387_s22 }
  0x17   : > { %1901 = sst [smem:[#allocation16_spill]] %s1411_s28  ;;  %s1959_s6 = smov (%p1537_p0, %s35_s6), 0 }
  0x18   : > { %1902 = sst [smem:[#allocation17_spill]] %s1415_s29  ;;  %p1884_p2 = scmp.eq.s32.totalorder %s1419_s30, 0 }
  0x19   : > { %1904 = sst [smem:[#allocation18_spill]] %s1959_s6  ;;  %p64_p3 = scmp.ne.s32.totalorder %s1387_s22, %s1383_s21 }
  0x1a   : > { %s1553_s10 = ssub.s32 %s1407_s27, %s1959_s6  ;;  %p1555_p4 = scmp.eq.s32.totalorder %s887_s5, 0 }
  0x1b   : > { %p1561_p5 = por %p1884_p2, %p58_p1  ;;  %p1565_p6 = scmp.eq.s32.totalorder %s887_s5, 7 }
  0x1c   : > { %p1571_p7 = por %p1555_p4, %p64_p3  ;;  %p1883_p8 = scmp.lt.s32.totalorder %s1419_s30, 8 }
  0x1d   : > { %s196_s21 = sand.u32 1, %s1391_s23   ;;  %s893_s8 = sshll.u32 %s1407_s27, 1 }
  0x1e   : > { %s1908_s14 = scalar_select %p1571_p7, 1, 0 }
  0x1f   : > { %s891_s9 = sshll.u32 %s196_s21, 5  ;;  %s953_s6 = sshll.u32 %s1415_s29, 4 }
  0x20   : > { %1909 = sst [smem:[#allocation19_spill]] %s1908_s14  ;;  %s200_s4 = scalar_lea.vmem [#allocation3], %s891_s9 }
  0x21   : > { %s210_s24 = sshll.u32 %s200_s4, 4  ;;  %s207_s3 = sadd.s32 %s953_s6, %s893_s8  ;;  %s211_s24 = int_to_ptr.vmem [resolvable:$true] %s210_s24 }
  0x22   : > { %s895_s2 = sshll.u32 %s207_s3, 6  ;;  %p1583_p9 = pnand %p1883_p8, %p1561_p5 }
  0x23   : > { %s1911_s0 = sld [smem:[#allocation22_spill]]  ;;  %p901_p10 = scmp.ge.s32.totalorder %s1419_s30, 1 }
  0x24   : > { %s197_s22 = scalar_lea.sflag [#allocation4], %s196_s21  ;;  %p1201_p11 = pneg %p1583_p9 }
  0x25   : > { %s1212_s9 = scalar_lea.vmem %s211_s24, 512  ;;  %s1421_s3 = smov [#allocation3]  }
  0x26   : > { %p1213_p12 = scmp.ne.s32.totalorder %s211_s24, %s1212_s9  ;;  %s1217_s4 = sshll.u32 %s1421_s3, 4  ;;  %s1218_s4 = int_to_ptr.vmem [resolvable:$false] %s1217_s4 }
  0x27   : > { %s1219_s6 = scalar_lea.vmem %s1218_s4, 1024  ;;  %p1220_p3 = scmp.lt.s32.totalorder %s211_s24, %s1218_s4 }
  0x28   : > { %p1215_p13 = pnand %p1213_p12, %p1201_p11  ;;  %p1221_p5 = scmp.lt.s32.totalorder %s1219_s6, %s1212_s9 }
  0x29   : > { %s209_s14 = scalar_lea.hbm %s1911_s0, %s895_s2 }
  0x2a   : > { %p1216_p1 = pneg %p1215_p13  ;;  %p1222_p8 = por %p1221_p5, %p1220_p3 }
  0x2c   : > { %p1223_p2 = pnand %p1222_p8, %p1216_p1 }
  0x2e   : > { %1226 = shalt.err (!%p1223_p2)
}
  0x2f   : > { %s1885_s25 = smov 256   ;;  %s1886_s2 = smov 128  }
  0x30   : > { %s1887_s26 = smov 8   ;;  %p259_p2 = scmp.lt.s32.totalorder %s1419_s30, 9 }
  0x31   : > { %997 = dma.hbm_to_vmem [thread:$0]  (!%p1583_p9), %s209_s14, 512, %s211_s24, %s197_s22, %s1885_s25, %s1886_s2, %s1887_s26  }
  0x32   : > { %p1601_p8 = pnand %p901_p10, %p259_p2  ;;  %s888_s12 = sadd.s32 4294967294, %s1419_s30  }
  0x33   : > { %s38_s21 = sadd.s32 1, %s1411_s28  ;;  %s79_s5 = sadd.s32 1, %s1379_s20 }
  0x34   : > { %s1961_s21 = smov (!%p1537_p0, %s38_s21), %s1411_s28  ;;  %p86_p11 = scmp.ne.s32.totalorder %s1379_s20, %s1375_s19 }
  0x35   : > { %p40_p12 = scmp.ge.s32.totalorder %s1961_s21, 2  ;;  %p92_p9 = scmp.ne.s32.totalorder %s1375_s19, %s1371_s18 }
  0x36   : > { %p1913_p13 = scmp.eq.s32.totalorder %s1419_s30, 0  ;;  %s159_s24 = sadd.s32 1, %s1367_s17 }
  0x37   : > { %s1963_s21 = smov (%p40_p12, %s1961_s21), 0  ;;  %s1916_s14 = sadd.s32 1, %s1415_s29 }
  0x38   : > { %p1617_p1 = por %p86_p11, %p1913_p13  ;;  %1915 = sst [smem:[#allocation20_spill]] %s1963_s21 }
  0x39   : > { %s1965_s14 = smov (!%p40_p12, %s1916_s14), %s1415_s29  ;;  %s75_s7 = ssub.s32 %s1411_s28, %s1963_s21 }
  0x3a   : > { %p1631_p0 = por %p92_p9, %p1555_p4  ;;  %p44_p10 = scmp.ge.s32.totalorder %s1965_s14, 2 }
  0x3b   : > { %s76_s18 = sor.u32 %s75_s7, %s1553_s10  ;;  %p169_p5 = scmp.ne.s32.totalorder %s1367_s17, %s1363_s16 }
  0x3c   : > { %p77_p3 = scmp.eq.s32.totalorder %s76_s18, 0  ;;  %s1967_s14 = smov (%p44_p10, %s1965_s14), 0 }
  0x3d   : > { %1918 = sst [smem:[#allocation21_spill]] %s1967_s14  ;;  %s46_s11 = ssub.s32 %s1415_s29, %s1967_s14 }
  0x3e   : > { %s1641_s3 = scalar_select %p77_p3, %s1379_s20, %s79_s5  }
  0x3f   : > { %p1647_p2 = por %p1565_p6, %p169_p5  ;;  %s48_s6 = sor.u32 %s1553_s10, %s46_s11 }
  0x40   : > { %s156_s25 = sor.u32 %s75_s7, %s46_s11  ;;  %p49_p4 = scmp.eq.s32.totalorder %s48_s6, 0 }
  0x41   : > { %p157_p11 = scmp.eq.s32.totalorder %s156_s25, 0  ;;  %p175_p12 = scmp.ne.s32.totalorder %s1363_s16, %s1359_s15 }
  0x42   : > { %p176_p9 = scmp.eq.s32.totalorder %s888_s12, 7  ;;  %s1920_s18 = sadd.s32 1, %s1391_s23 }
  0x43   : > { %s1657_s2 = scalar_select %p49_p4, %s1391_s23, %s1920_s18  }
  0x44   : > { %s1660_s26 = scalar_select %p157_p11, %s1367_s17, %s159_s24  }
  0x45   : > { %p1662_p13 = por %p176_p9, %p175_p12  ;;  %s220_s13 = sand.u32 1, %s1379_s20  }
  0x46   : > { %s896_s0 = sshll.u32 %s220_s13, 8  ;;  %s898_s14 = sshll.u32 %s1411_s28, 1 }
  0x47   : > { %s954_s10 = sshll.u32 %s1407_s27, 7  ;;  %s224_s7 = scalar_lea.vmem [#allocation6], %s896_s0 }
  0x48   : > { %s234_s11 = sshll.u32 %s224_s7, 4  ;;  %s231_s6 = sadd.s32 %s954_s10, %s898_s14  ;;  %s235_s11 = int_to_ptr.vmem [resolvable:$true] %s234_s11 }
  0x49   : > { %s900_s25 = sshll.u32 %s231_s6, 6  ;;  %p1922_p6 = scmp.lt.s32.totalorder %s1419_s30, 8 }
  0x4a   : > { %s1924_s1 = sld [smem:[#allocation23_spill]]  ;;  %s221_s29 = scalar_lea.sflag [#allocation7], %s220_s13 }
  0x4b   : > { %p1673_p10 = pnand %p1922_p6, %p1617_p1  ;;  %s1240_s28 = scalar_lea.vmem %s235_s11, 4096 }
  0x4c   : > { %p1241_p5 = scmp.ne.s32.totalorder %s235_s11, %s1240_s28  ;;  %s1425_s0 = smov [#allocation6]  }
  0x4d   : > { %p1229_p3 = pneg %p1673_p10  ;;  %s1245_s14 = sshll.u32 %s1425_s0, 4  ;;  %s1246_s14 = int_to_ptr.vmem [resolvable:$false] %s1245_s14 }
  0x4e   : > { %s1247_s22 = scalar_lea.vmem %s1246_s14, 8192  ;;  %p1248_p1 = scmp.lt.s32.totalorder %s235_s11, %s1246_s14 }
  0x4f   : > { %p1243_p4 = pnand %p1241_p5, %p1229_p3  ;;  %p1249_p12 = scmp.lt.s32.totalorder %s1247_s22, %s1240_s28 }
  0x50   : > { %s233_s21 = scalar_lea.hbm %s1924_s1, %s900_s25 }
  0x51   : > { %p1244_p11 = pneg %p1243_p4  ;;  %p1250_p9 = por %p1249_p12, %p1248_p1 }
  0x53   : > { %p1251_p6 = pnand %p1250_p9, %p1244_p11 }
  0x55   : > { %1254 = shalt.err (!%p1251_p6)
}
  0x56   : > { %s1925_s10 = smov 8   ;;  %s1926_s7 = smov 128  }
  0x57   : > { %s1927_s13 = smov 256   ;;  %263 = sbr.rel (%p1601_p8) target bundleno = 567 (0x237), region = 36 }
  0x58   : > { %1000 = dma.hbm_to_vmem [thread:$0]  (!%p1673_p10), %s233_s21, 4096, %s235_s11, %s221_s29, %s1927_s13, %s1926_s7, %s1925_s10  }
  0x59   : > { %s1928_s6 = sld [smem:[#allocation12_spill]] (!%p1601_p8) }
  0x5f   : > { %s265_s24 = sand.u32 1, %s1928_s6  }
  0x60   : > { %s902_s18 = sshll.u32 %s265_s24, 5  ;;  %s266_s0 = scalar_lea.sflag [#allocation4], %s265_s24 }
  0x61   : > { %s1690_s1 = scalar_lea.vmem [#allocation3], %s902_s18 }
  0x62   : > { %1346 = dma.done.wait (%p1571_p7), %s266_s0, 512  }
  0x63   : > { %1348 = vsyncadd (%p1571_p7), %s266_s0, 4294966784  ;;  %s274_s28 = sand.u32 1, %s1375_s19  }
  0x64   : > { %s903_s12 = sshll.u32 %s274_s28, 8  ;;  %s275_s29 = scalar_lea.sflag [#allocation7], %s274_s28 }
  0x65   : > { %s1697_s21 = scalar_lea.vmem [#allocation6], %s903_s12 }
  0x66   : > { %1350 = dma.done.wait (%p1631_p0), %s275_s29, 4096  }
  0x67   : > { %1352 = vsyncadd (%p1631_p0), %s275_s29, 4294963200  ;;  %s1930_s8 = sld [smem:[#allocation15_spill]]  ;;  %s314_s14 = sand.u32 1, %s1363_s16  }
  0x68   : > { %s1931_s11 = sld [smem:[#allocation14_spill]]  ;;  %s904_s10 = sshll.u32 %s314_s14, 6 }
  0x69   : > { %s1932_s9 = sld [smem:[#allocation24_spill]] }
  0x6a   : > { %s1933_s12 = sld [smem:[#allocation25_spill]] }
  0x6d   : > { %s905_s22 = sshll.u32 %s1930_s8, 2  ;;  %s1723_s8 = scalar_lea.vmem [#allocation8], %s904_s10 }
  0x6e   : > { %p322_p7 = scmp.lt.s32.totalorder %s905_s22, 7  ;;  %s1708_s7 = sshll.u32 %s1931_s11, 1 }
  0x6f   : > { %p328_p8 = scmp.lt.s32.totalorder %s1708_s7, 3  ;;  %s1934_s11 = sld [smem:[#allocation13_spill]] }
  0x70   : > { %s1969_s22 = smov (!%p322_p7, %s905_s22), 7 }
  0x71   : > { %s906_s13 = sshll.u32 %s1969_s22, 3 }
  0x72   : > { %s1714_s24 = scalar_lea.vmem %s1932_s9, %s906_s13 }
  0x73   : > { %s1717_s18 = scalar_select %p328_p8, %s1708_s7, 3 }
  0x75   : > { %s330_s29 = scalar_lea.vmem %s1933_s12, %s1717_s18  ;;  %p908_p0 = scmp.ne.s32.totalorder %s1934_s11, 0 }
  0x77   : > { %337 = sbr.rel (%p908_p0) target bundleno = 129 (0x81), region = 48 }
  0x7c   : > { %v1426_v0 = vmov 0.0  }
  0x7d   : > { %338 = vst [vmem:[#allocation2 + $0x30] sm:$0xff] %v1426_v0  ;;  %339 = vst [vmem:[#allocation2] sm:$0xff] %v1426_v0 }
  0x7e   : > { %340 = vst [vmem:[#allocation2 + $0x18] sm:$0xff] %v1426_v0  ;;  %341 = vst [vmem:[#allocation2 + $0x10] sm:$0xff] %v1426_v0 }
  0x7f   : > { %342 = vst [vmem:[#allocation2 + $0x8] sm:$0xff] %v1426_v0  ;;  %343 = vst [vmem:[#allocation2 + $0x20] sm:$0xff] %v1426_v0 }
  0x80   : > { %344 = vst [vmem:[#allocation2 + $0x28] sm:$0xff] %v1426_v0  ;;  %345 = vst [vmem:[#allocation2 + $0x38] sm:$0xff] %v1426_v0 }
  0x81 PF: > { %v1143_v1 = vld [vmem:[%s1697_s21 + $0x74] ss:$8 sps:$4 sm:$0xff]   ;;  %v1145_v2 = vld [vmem:[%s1697_s21 + $0x70] ss:$8 sps:$4 sm:$0xff]   ;;  %v1146_v3 = vld [vmem:[%s1697_s21 + $0x64] ss:$8 sps:$4 sm:$0xff]  }
  0x82   : > { %570 = vmatprep.subr.bf16.mxu0 %v1143_v1  ;;  %956 = vmatprep.subr.bf16.mxu1 %v1143_v1  ;;  %v1148_v4 = vld [vmem:[%s1697_s21 + $0x60] ss:$8 sps:$4 sm:$0xff]   ;;  %v1149_v5 = vld [vmem:[%s1697_s21 + $0x54] ss:$8 sps:$4 sm:$0xff]   ;;  %v1151_v6 = vld [vmem:[%s1697_s21 + $0x50] ss:$8 sps:$4 sm:$0xff]  }
  0x83   : > { %571 = vmatpush1.bf16.msra.mxu0 %v1145_v2  ;;  %972 = vmatpush1.bf16.msra.mxu1 %v1145_v2  ;;  %v1152_v7 = vld [vmem:[%s1697_s21 + $0x44] ss:$8 sps:$4 sm:$0xff]   ;;  %v1154_v8 = vld [vmem:[%s1697_s21 + $0x40] ss:$8 sps:$4 sm:$0xff]   ;;  %v1155_v9 = vld [vmem:[%s1697_s21 + $0x34] ss:$8 sps:$4 sm:$0xff]  }
  0x84   : > { %572 = vmatprep.subr.bf16.mxu0 %v1146_v3  ;;  %957 = vmatprep.subr.bf16.mxu1 %v1146_v3  ;;  %v1157_v10 = vld [vmem:[%s1697_s21 + $0x30] ss:$8 sps:$4 sm:$0xff]   ;;  %v1158_v11 = vld [vmem:[%s1697_s21 + $0x24] ss:$8 sps:$4 sm:$0xff]   ;;  %v1160_v12 = vld [vmem:[%s1697_s21 + $0x20] ss:$8 sps:$4 sm:$0xff]  }
  0x85   : > { %v1161_v13 = vld [vmem:[%s1697_s21 + $0x14] ss:$8 sps:$4 sm:$0xff]   ;;  %v1193_v14 = vld [vmem:[%s1690_s1 + $0x4] ss:$8 sps:$4 sm:$0xff]   ;;  %v1163_v15 = vld [vmem:[%s1697_s21 + $0x10] ss:$8 sps:$4 sm:$0xff]  }
  0x86   : > { %v1196_v16 = vld [vmem:[%s1690_s1 + $0x14] ss:$8 sps:$4 sm:$0xff]   ;;  %v1164_v17 = vld [vmem:[%s1697_s21 + $0x4] ss:$8 sps:$4 sm:$0xff]   ;;  %602 = vmatprep.mubr.bf16.mxu0 %v1193_v14  ;;  %v1166_v18 = vld [vmem:[%s1697_s21] ss:$8 sps:$4 sm:$0xff]  }
  0x87   : > { %573 = vmatpush1.bf16.msra.mxu0 %v1148_v4  ;;  %973 = vmatpush1.bf16.msra.mxu1 %v1148_v4  ;;  %v1167_v19 = vld [vmem:[%s1697_s21 + $0xf4] ss:$8 sps:$4 sm:$0xff]   ;;  %v1169_v20 = vld [vmem:[%s1697_s21 + $0xf0] ss:$8 sps:$4 sm:$0xff]   ;;  %v1170_v21 = vld [vmem:[%s1697_s21 + $0xe4] ss:$8 sps:$4 sm:$0xff]  }
  0x88   : > { %574 = vmatprep.subr.bf16.mxu0 %v1149_v5  ;;  %958 = vmatprep.subr.bf16.mxu1 %v1149_v5  ;;  %v1172_v22 = vld [vmem:[%s1697_s21 + $0xe0] ss:$8 sps:$4 sm:$0xff]   ;;  %v1173_v23 = vld [vmem:[%s1697_s21 + $0xd4] ss:$8 sps:$4 sm:$0xff]   ;;  %v1175_v24 = vld [vmem:[%s1697_s21 + $0xd0] ss:$8 sps:$4 sm:$0xff]  }
  0x89   : > { %612 = vmatprep.mubr.bf16.mxu1 %v1196_v16  ;;  %v1176_v25 = vld [vmem:[%s1697_s21 + $0xc4] ss:$8 sps:$4 sm:$0xff]   ;;  %v1178_v26 = vld [vmem:[%s1697_s21 + $0xc0] ss:$8 sps:$4 sm:$0xff]   ;;  %v1179_v27 = vld [vmem:[%s1697_s21 + $0xb4] ss:$8 sps:$4 sm:$0xff]  }
  0x8a   : > { %v1181_v28 = vld [vmem:[%s1697_s21 + $0xb0] ss:$8 sps:$4 sm:$0xff]   ;;  %v1182_v29 = vld [vmem:[%s1697_s21 + $0xa4] ss:$8 sps:$4 sm:$0xff]   ;;  %v1184_v30 = vld [vmem:[%s1697_s21 + $0xa0] ss:$8 sps:$4 sm:$0xff]  }
  0x8b   : > { %575 = vmatpush1.bf16.msra.mxu0 %v1151_v6  ;;  %974 = vmatpush1.bf16.msra.mxu1 %v1151_v6  ;;  %v1185_v31 = vld [vmem:[%s1697_s21 + $0x94] ss:$8 sps:$4 sm:$0xff]   ;;  %v1187_v32 = vld [vmem:[%s1697_s21 + $0x90] ss:$8 sps:$4 sm:$0xff]   ;;  %v1188_v33 = vld [vmem:[%s1697_s21 + $0x84] ss:$8 sps:$4 sm:$0xff]  }
  0x8c   : > { %576 = vmatprep.subr.bf16.mxu0 %v1152_v7  ;;  %959 = vmatprep.subr.bf16.mxu1 %v1152_v7  ;;  %v1190_v34 = vld [vmem:[%s1697_s21 + $0x80] ss:$8 sps:$4 sm:$0xff]   ;;  %v1194_v36 = vld [vmem:[%s1690_s1 + $0x10] ss:$8 sps:$4 sm:$0xff]  }
  0x8d   : > { %v1191_v35 = vld [vmem:[%s1690_s1] ss:$8 sps:$4 sm:$0xff]   ;;  %v346_v37 = vld [vmem:[#allocation2 + $0x30] sm:$0xff]  ;;  %v348_v47 = vld [vmem:[#allocation2 + $0x18] sm:$0xff]  ;;  %s1935_s1 = sld [smem:[#allocation13_spill]] }
  0x8e   : > { %v350_v38 = vld [vmem:[#allocation2 + $0x8] sm:$0xff]  ;;  %v347_v41 = vld [vmem:[#allocation2] sm:$0xff]  ;;  %v349_v53 = vld [vmem:[#allocation2 + $0x10] sm:$0xff] }
  0x8f   : > { %577 = vmatpush1.bf16.msra.mxu0 %v1154_v8  ;;  %975 = vmatpush1.bf16.msra.mxu1 %v1154_v8  ;;  %v351_v42 = vld [vmem:[#allocation2 + $0x20] sm:$0xff]  ;;  %v352_v48 = vld [vmem:[#allocation2 + $0x28] sm:$0xff]  ;;  %v353_v54 = vld [vmem:[#allocation2 + $0x38] sm:$0xff] }
  0x90   : > { %578 = vmatprep.subr.bf16.mxu0 %v1155_v9  ;;  %960 = vmatprep.subr.bf16.mxu1 %v1155_v9 }
  0x93   : > { %579 = vmatpush1.bf16.msra.mxu0 %v1157_v10  ;;  %976 = vmatpush1.bf16.msra.mxu1 %v1157_v10  ;;  %p945_p10 = scmp.ne.s32.totalorder %s1935_s1, 1 }
  0x94   : > { %580 = vmatprep.subr.bf16.mxu0 %v1158_v11  ;;  %961 = vmatprep.subr.bf16.mxu1 %v1158_v11 }
  0x97   : > { %581 = vmatpush1.bf16.msra.mxu0 %v1160_v12  ;;  %977 = vmatpush1.bf16.msra.mxu1 %v1160_v12 }
  0x98   : > { %582 = vmatprep.subr.bf16.mxu0 %v1161_v13  ;;  %962 = vmatprep.subr.bf16.mxu1 %v1161_v13 }
  0x9b   : > { %583 = vmatpush1.bf16.msra.mxu0 %v1163_v15  ;;  %978 = vmatpush1.bf16.msra.mxu1 %v1163_v15 }
  0x9c   : > { %584 = vmatprep.subr.bf16.mxu0 %v1164_v17  ;;  %963 = vmatprep.subr.bf16.mxu1 %v1164_v17 }
  0x9f   : > { %585 = vmatpush1.bf16.msra.mxu0 %v1166_v18  ;;  %979 = vmatpush1.bf16.msra.mxu1 %v1166_v18 }
  0xa0   : > { %586 = vmatprep.subr.bf16.mxu0 %v1167_v19  ;;  %964 = vmatprep.subr.bf16.mxu1 %v1167_v19 }
  0xa3   : > { %587 = vmatpush2.bf16.msra.mxu0 %v1169_v20  ;;  %980 = vmatpush2.bf16.msra.mxu1 %v1169_v20 }
  0xa4   : > { %588 = vmatprep.subr.bf16.mxu0 %v1170_v21  ;;  %965 = vmatprep.subr.bf16.mxu1 %v1170_v21 }
  0xa7   : > { %589 = vmatpush2.bf16.msra.mxu0 %v1172_v22  ;;  %981 = vmatpush2.bf16.msra.mxu1 %v1172_v22 }
  0xa8   : > { %590 = vmatprep.subr.bf16.mxu0 %v1173_v23  ;;  %966 = vmatprep.subr.bf16.mxu1 %v1173_v23 }
  0xab   : > { %591 = vmatpush2.bf16.msra.mxu0 %v1175_v24  ;;  %982 = vmatpush2.bf16.msra.mxu1 %v1175_v24 }
  0xac   : > { %592 = vmatprep.subr.bf16.mxu0 %v1176_v25  ;;  %967 = vmatprep.subr.bf16.mxu1 %v1176_v25 }
  0xaf   : > { %593 = vmatpush2.bf16.msra.mxu0 %v1178_v26  ;;  %983 = vmatpush2.bf16.msra.mxu1 %v1178_v26 }
  0xb0   : > { %594 = vmatprep.subr.bf16.mxu0 %v1179_v27  ;;  %968 = vmatprep.subr.bf16.mxu1 %v1179_v27 }
  0xb3   : > { %595 = vmatpush2.bf16.msra.mxu0 %v1181_v28  ;;  %984 = vmatpush2.bf16.msra.mxu1 %v1181_v28 }
  0xb4   : > { %596 = vmatprep.subr.bf16.mxu0 %v1182_v29  ;;  %969 = vmatprep.subr.bf16.mxu1 %v1182_v29 }
  0xb7   : > { %597 = vmatpush2.bf16.msra.mxu0 %v1184_v30  ;;  %985 = vmatpush2.bf16.msra.mxu1 %v1184_v30 }
  0xb8   : > { %598 = vmatprep.subr.bf16.mxu0 %v1185_v31  ;;  %970 = vmatprep.subr.bf16.mxu1 %v1185_v31 }
  0xbb   : > { %599 = vmatpush2.bf16.msra.mxu0 %v1187_v32  ;;  %986 = vmatpush2.bf16.msra.mxu1 %v1187_v32 }
  0xbc   : > { %600 = vmatprep.subr.bf16.mxu0 %v1188_v33  ;;  %971 = vmatprep.subr.bf16.mxu1 %v1188_v33 }
  0xbf   : > { %601 = vmatpush2.bf16.msra.mxu0 %v1190_v34  ;;  %987 = vmatpush2.bf16.msra.mxu1 %v1190_v34 }
  0xc2   : > { %603 = vmatmul.mubr.bf16.vlgmr.msra.gmra.mxu0 %v1191_v35  ;;  %613 = vmatmul.mubr.bf16.vlgmr.msra.gmra.mxu1 %v1194_v36 }
 0x182   : > { %v604_v39 = vpop.f32.mrf.mxu0  ;;  %v614_v40 = vpop.f32.mrf.mxu1 }
 0x183   : > { %v623_v43 = vadd.f32 %v604_v39, %v346_v37  ;;  %v627_v44 = vadd.f32 %v614_v40, %v350_v38 }
 0x184   : > { %v606_v45 = vpop.f32.mrf.mxu0  ;;  %v616_v46 = vpop.f32.mrf.mxu1 }
 0x185   : > { %631 = vst [vmem:[#allocation2 + $0x30] sm:$0xff] %v623_v43  ;;  %635 = vst [vmem:[#allocation2 + $0x8] sm:$0xff] %v627_v44  ;;  %v624_v49 = vadd.f32 %v606_v45, %v347_v41  ;;  %v628_v50 = vadd.f32 %v616_v46, %v351_v42 }
 0x186   : > { %v608_v51 = vpop.f32.mrf.mxu0  ;;  %v618_v52 = vpop.f32.mrf.mxu1 }
 0x187   : > { %632 = vst [vmem:[#allocation2] sm:$0xff] %v624_v49  ;;  %636 = vst [vmem:[#allocation2 + $0x20] sm:$0xff] %v628_v50  ;;  %v625_v55 = vadd.f32 %v608_v51, %v348_v47  ;;  %v629_v56 = vadd.f32 %v618_v52, %v352_v48  ;;  %642 = sbr.rel (%p945_p10) target bundleno = 535 (0x217), region = 52 }
 0x188   : > { %v610_v57 = vpop.f32.mrf.mxu0  ;;  %v620_v58 = vpop.f32.mrf.mxu1 }
 0x189   : > { %633 = vst [vmem:[#allocation2 + $0x18] sm:$0xff] %v625_v55  ;;  %637 = vst [vmem:[#allocation2 + $0x28] sm:$0xff] %v629_v56  ;;  %v626_v59 = vadd.f32 %v610_v57, %v349_v53  ;;  %v630_v60 = vadd.f32 %v620_v58, %v353_v54 }
 0x18b   : > { %634 = vst [vmem:[#allocation2 + $0x10] sm:$0xff] %v626_v59  ;;  %638 = vst [vmem:[#allocation2 + $0x38] sm:$0xff] %v630_v60 }
 0x18c   : > { %v645_v61 = vld [vmem:[%s1714_s24 + $0x10] sm:$0xff]  ;;  %v643_v62 = vld [vmem:[%s1714_s24] sm:$0xff]  ;;  %v1427_v63 = vmov 0   ;;  %v646_v0 = vld [vmem:[%s1714_s24 + $0x18] sm:$0xff]  ;;  %v669_v2 = vlaneseq }
 0x18d   : > { %1198 = vset.pattern.permute.xlu1 %v1427_v63  ;;  %1197 = vset.pattern.permute.xlu0 %v1427_v63  ;;  %v644_v1 = vld [vmem:[%s1714_s24 + $0x8] sm:$0xff]  ;;  %v647_v6 = vld [vmem:[%s330_s29] sm:$0x3]  ;;  %v687_v9 = vld [vmem:[#allocation2 + $0x30] sm:$0xff] }
 0x18e   : > { %660 = vperm.xlu1 %1198, %v645_v61   ;;  %650 = vperm.xlu0 %1197, %v643_v62   ;;  %v670_v3 = vshrl.u32 %v669_v2, 7  ;;  %v691_v7 = vld [vmem:[#allocation2 + $0x8] sm:$0xff]  ;;  %v692_v8 = vld [vmem:[#allocation2 + $0x20] sm:$0xff]  ;;  %v695_v15 = vmul.f32 2.0, %v687_v9 }
 0x18f   : > { %v688_v10 = vld [vmem:[#allocation2] sm:$0xff]  ;;  %v699_v13 = vmul.f32 2.0, %v691_v7  ;;  %v700_v14 = vmul.f32 2.0, %v692_v8 }
 0x190   : > { %v671_v4 = vsub.s32 0, %v670_v3  ;;  %v675_v5 = vsub.s32 1, %v670_v3  ;;  %v696_v16 = vmul.f32 2.0, %v688_v10  ;;  %v693_v19 = vld [vmem:[#allocation2 + $0x28] sm:$0xff]  ;;  %v689_v25 = vld [vmem:[#allocation2 + $0x18] sm:$0xff] }
 0x191   : > { %v701_v31 = vmul.f32 2.0, %v693_v19  ;;  %v697_v34 = vmul.f32 2.0, %v689_v25 }
 0x192   : > { %665 = vperm.xlu1 %1198, %v646_v0   ;;  %655 = vperm.xlu0 %1197, %v644_v1   ;;  %v672_v11 = vrot.slane %v647_v6, %v671_v4  ;;  %v676_v12 = vrot.slane %v647_v6, %v675_v5  ;;  %v694_v24 = vld [vmem:[#allocation2 + $0x38] sm:$0xff]  ;;  %v690_v26 = vld [vmem:[#allocation2 + $0x10] sm:$0xff] }
 0x193   : > { %v702_v32 = vmul.f32 2.0, %v694_v24  ;;  %v698_v35 = vmul.f32 2.0, %v690_v26 }
 0x209   : > { %v661_v17 = vpop.permute.xlu1 %660  ;;  %v651_v18 = vpop.permute.xlu0 %650 }
 0x20a   : > { %v683_v20 = vadd.f32 %v672_v11, %v661_v17  ;;  %v684_v21 = vadd.f32 %v676_v12, %v661_v17  ;;  %v679_v22 = vadd.f32 %v672_v11, %v651_v18  ;;  %v680_v23 = vadd.f32 %v676_v12, %v651_v18 }
 0x20c   : > { %v707_v27 = vsub.f32 %v683_v20, %v699_v13  ;;  %v708_v28 = vsub.f32 %v684_v21, %v700_v14  ;;  %v703_v29 = vsub.f32 %v679_v22, %v695_v15  ;;  %v704_v30 = vsub.f32 %v680_v23, %v696_v16 }
 0x20d   : > { %v666_v33 = vpop.permute.xlu1 %665  ;;  %v656_v36 = vpop.permute.xlu0 %655 }
 0x20e   : > { %v715_v37 = vmax.f32 %v707_v27, 0.0  ;;  %v716_v38 = vmax.f32 %v708_v28, 0.0  ;;  %v711_v39 = vmax.f32 %v703_v29, 0.0  ;;  %v712_v40 = vmax.f32 %v704_v30, 0.0 }
 0x20f   : > { %v685_v41 = vadd.f32 %v672_v11, %v666_v33  ;;  %v686_v42 = vadd.f32 %v676_v12, %v666_v33  ;;  %v681_v43 = vadd.f32 %v672_v11, %v656_v36  ;;  %v682_v44 = vadd.f32 %v676_v12, %v656_v36 }
 0x210   : > { %723 = vst [vmem:[%s1723_s8 + $0x20] sm:$0xff] %v715_v37  ;;  %724 = vst [vmem:[%s1723_s8 + $0x28] sm:$0xff] %v716_v38 }
 0x211   : > { %719 = vst [vmem:[%s1723_s8] sm:$0xff] %v711_v39  ;;  %720 = vst [vmem:[%s1723_s8 + $0x8] sm:$0xff] %v712_v40  ;;  %v709_v45 = vsub.f32 %v685_v41, %v701_v31  ;;  %v710_v46 = vsub.f32 %v686_v42, %v702_v32  ;;  %v705_v47 = vsub.f32 %v681_v43, %v697_v34 }
 0x212   : > { %v706_v48 = vsub.f32 %v682_v44, %v698_v35 }
 0x213   : > { %v717_v49 = vmax.f32 %v709_v45, 0.0  ;;  %v718_v50 = vmax.f32 %v710_v46, 0.0  ;;  %v713_v51 = vmax.f32 %v705_v47, 0.0 }
 0x214   : > { %v714_v52 = vmax.f32 %v706_v48, 0.0 }
 0x215   : > { %725 = vst [vmem:[%s1723_s8 + $0x30] sm:$0xff] %v717_v49  ;;  %726 = vst [vmem:[%s1723_s8 + $0x38] sm:$0xff] %v718_v50 }
 0x216   : > { %721 = vst [vmem:[%s1723_s8 + $0x10] sm:$0xff] %v713_v51  ;;  %722 = vst [vmem:[%s1723_s8 + $0x18] sm:$0xff] %v714_v52 }
 0x217 PF: > { %s1937_s13 = sld [smem:[#allocation15_spill]]  ;;  %s744_s9 = sshll.u32 %s1723_s8, 4  ;;  %s1783_s9 = int_to_ptr.vmem [resolvable:$true] %s744_s9 }
 0x218   : > { %s1938_s28 = sld [smem:[#allocation26_spill]]  ;;  %s1792_s11 = scalar_lea.sflag [#allocation5], %s314_s14 }
 0x219   : > { %s1255_s1 = scalar_lea.vmem %s1783_s9, 1024 }
 0x21a   : > { %p1256_p3 = scmp.ne.s32.totalorder %s1783_s9, %s1255_s1 }
 0x21c   : > { %p1257_p5 = pnand %p1256_p3, %p1647_p2 }
 0x21d   : > { %s955_s6 = sshll.u32 %s1937_s13, 4 }
 0x21e   : > { %s741_s25 = sadd.s32 %s955_s6, %s1708_s7  ;;  %s1939_s12 = smov %s1938_s28 }
 0x21f   : > { %s950_s24 = sshll.u32 %s741_s25, 7  ;;  %p1258_p4 = pneg %p1257_p5 }
 0x220   : > { %s1788_s29 = scalar_lea.hbm %s1938_s28, %s950_s24  ;;  %s1428_s7 = smov [#allocation8]  }
 0x221   : > { %s1259_s8 = sshll.u32 %s1428_s7, 4  ;;  %s1260_s8 = int_to_ptr.vmem [resolvable:$false] %s1259_s8 }
 0x222   : > { %s1261_s21 = scalar_lea.vmem %s1260_s8, 2048  ;;  %p1262_p11 = scmp.lt.s32.totalorder %s1783_s9, %s1260_s8 }
 0x223   : > { %p1263_p1 = scmp.lt.s32.totalorder %s1261_s21, %s1255_s1 }
 0x225   : > { %p1264_p12 = por %p1263_p1, %p1262_p11 }
 0x227   : > { %p1265_p9 = pnand %p1264_p12, %p1258_p4 }
 0x229   : > { %1268 = shalt.err (!%p1265_p9)
}
 0x22a   : > { %s1269_s14 = scalar_lea.hbm %s1788_s29, 1024  ;;  %s1273_s13 = scalar_lea.hbm %s1939_s12, 4096 }
 0x22b   : > { %p1270_p6 = scmp.ne.s32.totalorder %s1788_s29, %s1269_s14  ;;  %p1274_p0 = scmp.lt.s32.totalorder %s1788_s29, %s1939_s12 }
 0x22c   : > { %p1275_p10 = scmp.lt.s32.totalorder %s1273_s13, %s1269_s14 }
 0x22d   : > { %p1271_p7 = pnand %p1270_p6, %p1647_p2 }
 0x22e   : > { %p1276_p3 = por %p1275_p10, %p1274_p0 }
 0x22f   : > { %p1272_p8 = pneg %p1271_p7 }
 0x231   : > { %p1277_p5 = pnand %p1276_p3, %p1272_p8 }
 0x233   : > { %1280 = shalt.err (!%p1277_p5)
}
 0x234   : > { %s1429_s24 = smov 256   ;;  %s1430_s18 = smov 512  }
 0x235   : > { %s1431_s0 = smov 16  }
 0x236   : > { %992 = dma.vmem_to_hbm [thread:$0]  (%p1647_p2), %s1783_s9, 1024, %s1788_s29, %s1792_s11, %s1429_s24, %s1430_s18, %s1431_s0  }
 0x237 PF: > { %p1006_p4 = scmp.ge.s32.totalorder %s1419_s30, 2  ;;  %s759_s28 = sand.u32 1, %s1359_s15  }
 0x238   : > { %s760_s1 = scalar_lea.sflag [#allocation5], %s759_s28 }
 0x239   : > { %p1002_p11 = pnand %p1006_p4, %p1662_p13 }
 0x23b   : > { %p1003_p1 = pneg %p1002_p11 }
 0x23d   : > { %1354 = dma.done.wait (%p1003_p1), %s760_s1, 1024  }
 0x23e   : > { %1356 = vsyncadd (%p1003_p1), %s760_s1, 4294966272  ;;  %s23_s30 = sadd.s32 1, %s1419_s30   ;;  %s1941_s21 = sld [smem:[#allocation12_spill]] }
 0x23f   : > { %p1820_p12 = scmp.ge.s32.totalorder %s23_s30, 10   ;;  %s1942_s25 = sld [smem:[#allocation16_spill]] }
 0x240   : > { %s1943_s4 = sld [smem:[#allocation17_spill]]  ;;  %s1947_s15 = smov %s1363_s16 }
 0x241   : > { %s1944_s5 = sld [smem:[#allocation18_spill]]  ;;  %s1948_s16 = smov %s1367_s17 }
 0x242   : > { %s1945_s28 = sld [smem:[#allocation20_spill]]  ;;  %s1949_s17 = smov %s1660_s26 }
 0x243   : > { %s1946_s29 = sld [smem:[#allocation21_spill]]  ;;  %s1950_s18 = smov %s1375_s19 }
 0x244   : > { %s1951_s19 = smov %s1379_s20  ;;  %s1952_s20 = smov %s1641_s3 }
 0x245   : > { %s1953_s22 = smov %s1391_s23  ;;  %s1954_s23 = smov %s1657_s2 }
 0x246   : > { %s1955_s24 = smov %s1407_s27  ;;  %s1956_s26 = smov %s1943_s4 }
 0x247   : > { %s1957_s27 = smov %s1944_s5  ;;  %22 = sbr.rel (!%p1820_p12) target bundleno = 19 (0x13), region = 108 }
 0x24c   :  { %765 = vsyncpa [#allocation4], 1 }
 0x24d   :  { %767 = vsyncpa [#allocation4 + $0x1], 1 }
 0x24e   :  { %768 = vsyncpa [#allocation7], 1 }
 0x24f   :  { %770 = vsyncpa [#allocation7 + $0x1], 1 }
 0x250   :  { %771 = vsyncpa [#allocation5], 1 }
 0x251   :  { %773 = vsyncpa [#allocation5 + $0x1], 1 }

</bundles_post_ra>
